<compile_context>
chip_gen: v6e
topology: v6e:2x2x1
jax: 0.10.0
libtpu: 0.0.40
codegen_flags: <defaults>
</compile_context>

<pallas_src>
import functools

import numpy as np
import jax
import jax.numpy as jnp
from jax.experimental import pallas as pl
from jax.experimental.pallas import tpu as pltpu

_POOL_OUT = 4               # AdaptiveAvgPool3d(4)
_GROUP = _POOL_OUT          # L2-norm group length (the pooled D axis)
_NCOLS = _POOL_OUT ** 3     # 64 pooled values per channel


def _round_up(x, m):
    return ((x + m - 1) // m) * m


def _v_tiling(v, tv_max=8192):
    """Pick the V (=D*H*W) reduction tile and the padded V extent."""
    vp = _round_up(v, 128)
    tv = min(vp, tv_max)          # collapse the K axis whenever it fits
    vp = _round_up(vp, tv)
    return tv, vp


# --------------------------------------------------------------------------
# Host-built constant matrices (static; built once outside the jit'd forward).
# --------------------------------------------------------------------------
def _adaptive_pool_matrix(in_size, out_size=_POOL_OUT):
    """Row i averages input slots [floor(i*n/o), ceil((i+1)*n/o)) — exact
    PyTorch AdaptiveAvgPool bin semantics (bins may overlap)."""
    p = np.zeros((out_size, in_size), np.float32)
    for i in range(out_size):
        s = (i * in_size) // out_size
        e = -(-((i + 1) * in_size) // out_size)      # ceil
        p[i, s:e] = 1.0 / (e - s)
    return p


def build_pool_matrix(d, h, w, v_padded):
    """(D*H*W, 64) pooling matrix; columns ordered (h_out, w_out, d_out) so the
    kernel output (C, 64) reshapes row-major straight into the PyTorch
    permute(0,2,3,1).flatten(0,2) layout.  Zero-padded to v_padded rows."""
    pd = _adaptive_pool_matrix(d)
    ph = _adaptive_pool_matrix(h)
    pw = _adaptive_pool_matrix(w)
    # out[d, h, w, ho, wo, do] = pd[do, d] * ph[ho, h] * pw[wo, w]
    pc = np.einsum("ad,bh,cw->dhwbca", pd, ph, pw).reshape(d * h * w, _NCOLS)
    pc = np.pad(pc, ((0, v_padded - d * h * w), (0, 0)))
    # TODO(synk): for very large D*H*W, switch to three separable 1-D pooling
    # passes to avoid an HBM-resident (V, 64) matrix and its read traffic.
    return jnp.asarray(pc, jnp.float32)


def build_group_sum_matrix():
    """64x64 block-diagonal ones: sq @ G broadcasts each 4-lane group's sum of
    squares back to every lane of the group (keeps the norm on the MXU)."""
    idx = np.arange(_NCOLS)
    g = (idx[:, None] // _GROUP == idx[None, :] // _GROUP).astype(np.float32)
    return jnp.asarray(g)


# --------------------------------------------------------------------------
# Pallas kernel: fused adaptive-avg-pool (as matmul) + L2 normalisation.
# Grid = (channel tiles [parallel], V tiles [arbitrary / reduction]).
# --------------------------------------------------------------------------
def _reshapef_kernel(x_ref, pool_ref, gsum_ref, o_ref, acc_ref, *, eps):
    k = pl.program_id(1)

    @pl.when(k == 0)
    def _():
        acc_ref[...] = jnp.zeros_like(acc_ref)

    # (tc, tv) @ (tv, 64) -> (tc, 64), f32 accumulation across V tiles.
    acc_ref[...] += jnp.dot(x_ref[...], pool_ref[...],
                            preferred_element_type=jnp.float32)

    @pl.when(k == pl.num_programs(1) - 1)
    def _():
        pooled = acc_ref[...]                                   # (tc, 64)
        ssum = jnp.dot(pooled * pooled, gsum_ref[...],          # per-group sum
                       preferred_element_type=jnp.float32)      # broadcast back
        o_ref[...] = (pooled / (jnp.sqrt(ssum) + eps)).astype(o_ref.dtype)


def reshapef_forward(x, pool_mat, gsum_mat, *, tv, tc=8, eps=1e-7):
    """x: (C, D, H, W) float32 -> (C*16, 4) float32 (ReshapeF.forward)."""
    c, d, h, w = x.shape
    v = d * h * w
    vp = pool_mat.shape[0]
    assert vp % tv == 0 and vp >= v
    cp = _round_up(c, tc)

    x2 = x.reshape(c, v).astype(jnp.float32)
    if cp != c or vp != v:
        x2 = jnp.pad(x2, ((0, cp - c), (0, vp - v)))

    kernel = functools.partial(_reshapef_kernel, eps=eps)
    out = pl.pallas_call(
        kernel,
        out_shape=jax.ShapeDtypeStruct((cp, _NCOLS), jnp.float32),
        grid_spec=pltpu.PrefetchScalarGridSpec(
            num_scalar_prefetch=0,
            grid=(cp // tc, vp // tv),
            in_specs=[
                pl.BlockSpec((tc, tv), lambda i, k: (i, k)),          # x
                pl.BlockSpec((tv, _NCOLS), lambda i, k: (k, 0)),      # pool mat
                pl.BlockSpec((_NCOLS, _NCOLS), lambda i, k: (0, 0)),  # group-sum
            ],
            out_specs=pl.BlockSpec((tc, _NCOLS), lambda i, k: (i, 0)),
            scratch_shapes=[pltpu.VMEM((tc, _NCOLS), jnp.float32)],
        ),
        compiler_params=pltpu.CompilerParams(
            dimension_semantics=("parallel", "arbitrary")),
    )(x2, pool_mat, gsum_mat)

    # (C, 64) row-major == (C*16, 4) with rows (c, h', w') and cols d'.
    return out[:c].reshape(c * _POOL_OUT * _POOL_OUT, _POOL_OUT)


# --------------------------------------------------------------------------
if __name__ == "__main__":
    # 4-D input (C, D, H, W); D=10 exercises PyTorch's overlapping adaptive bins.
    C, D, H, W = 6, 10, 12, 16
    key = jax.random.PRNGKey(0)
    x = jax.random.normal(key, (C, D, H, W), jnp.float32)

    tv, vp = _v_tiling(D * H * W)
    pool_mat = build_pool_matrix(D, H, W, vp)
    gsum_mat = build_group_sum_matrix()

    fwd = jax.jit(functools.partial(reshapef_forward, tv=tv))
    out = jax.block_until_ready(fwd(x, pool_mat, gsum_mat))
    assert out.shape == (C * 16, 4), out.shape

    # --- numpy reference with exact AdaptiveAvgPool3d bin semantics ---------
    xn = np.asarray(x, np.float64)
    pooled = np.zeros((C, 4, 4, 4), np.float64)
    for i in range(4):
        d0, d1 = (i * D) // 4, -(-((i + 1) * D) // 4)
        for j in range(4):
            h0, h1 = (j * H) // 4, -(-((j + 1) * H) // 4)
            for k in range(4):
                w0, w1 = (k * W) // 4, -(-((k + 1) * W) // 4)
                pooled[:, i, j, k] = xn[:, d0:d1, h0:h1, w0:w1].mean(axis=(1, 2, 3))
    z = np.transpose(pooled, (0, 2, 3, 1)).reshape(C * 16, 4)
    ref = z / (np.sqrt((z * z).sum(1, keepdims=True)) + 1e-7)

    np.testing.assert_allclose(np.asarray(out, np.float64), ref,
                               rtol=1e-4, atol=1e-5)
    assert bool(jnp.all(jnp.isfinite(out)))
    print("KERNEL_OK")
</pallas_src>

<mosaic_0001>
module attributes {stable_mosaic.version = 11 : i64} {
  func.func @_reshapef_kernel(%arg0: i32, %arg1: i32, %arg2: memref<8x1920xf32, #tpu.memory_space<vmem>>, %arg3: memref<1920x64xf32, #tpu.memory_space<vmem>>, %arg4: memref<64x64xf32, #tpu.memory_space<vmem>>, %arg5: memref<8x64xf32, #tpu.memory_space<vmem>>, %arg6: memref<8x64xf32, #tpu.memory_space<vmem>>) attributes {dimension_semantics = [#tpu.dimension_semantics<parallel>, #tpu.dimension_semantics<arbitrary>], iteration_bounds = array<i64: 1, 1>, scalar_prefetch = 0 : i64, scratch_operands = 1 : i64, tpu.core_type = #tpu.core_type<tc>, window_params = [{transform_indices = @transform_0, window_bounds = array<i64: 8, 1920>}, {transform_indices = @transform_1, window_bounds = array<i64: 1920, 64>}, {pipeline_mode = #tpu.pipeline_mode<synchronous>, transform_indices = @transform_2, window_bounds = array<i64: 64, 64>}, {transform_indices = @transform_3, window_bounds = array<i64: 8, 64>}]} {
    %c0_i32 = arith.constant 0 : i32
    %0 = arith.cmpi eq, %arg1, %c0_i32 : i32
    %1 = arith.extui %0 : i1 to i32
    %c0_i32_0 = arith.constant 0 : i32
    %2 = arith.cmpi ne, %1, %c0_i32_0 : i32
    scf.if %2 {
      %cst_10 = arith.constant 0.000000e+00 : f32
      %12 = vector.broadcast %cst_10 : f32 to vector<8x64xf32>
      %c0_11 = arith.constant 0 : index
      %c0_12 = arith.constant 0 : index
      %13 = vector.load %arg6[%c0_11, %c0_12] : memref<8x64xf32, #tpu.memory_space<vmem>>, vector<8x64xf32>
      tpu.vector_store %arg6[%c0_11, %c0_12], %12 {strides = array<i32>} : memref<8x64xf32, #tpu.memory_space<vmem>>, vector<8x64xf32>,
    } else {
    }
    %c0 = arith.constant 0 : index
    %c0_1 = arith.constant 0 : index
    %3 = vector.load %arg6[%c0, %c0_1] : memref<8x64xf32, #tpu.memory_space<vmem>>, vector<8x64xf32>
    %c0_2 = arith.constant 0 : index
    %c0_3 = arith.constant 0 : index
    %4 = vector.load %arg2[%c0_2, %c0_3] : memref<8x1920xf32, #tpu.memory_space<vmem>>, vector<8x1920xf32>
    %c0_4 = arith.constant 0 : index
    %c0_5 = arith.constant 0 : index
    %5 = vector.load %arg3[%c0_4, %c0_5] : memref<1920x64xf32, #tpu.memory_space<vmem>>, vector<1920x64xf32>
    %cst = arith.constant dense<0.000000e+00> : vector<8x64xf32>
    %6 = tpu.matmul %4, %5, %cst {dimension_numbers = #tpu.dot_dimension_numbers<[1], [0], [0], [1], [0, 0, 1, 1], [], []>} : vector<8x1920xf32>, vector<1920x64xf32>, vector<8x64xf32> -> vector<8x64xf32>
    %7 = arith.addf %3, %6 : vector<8x64xf32>
    %c0_6 = arith.constant 0 : index
    %c0_7 = arith.constant 0 : index
    %8 = vector.load %arg6[%c0_6, %c0_7] : memref<8x64xf32, #tpu.memory_space<vmem>>, vector<8x64xf32>
    tpu.vector_store %arg6[%c0_6, %c0_7], %7 {strides = array<i32>} : memref<8x64xf32, #tpu.memory_space<vmem>>, vector<8x64xf32>,
    %c0_i32_8 = arith.constant 0 : i32
    %9 = arith.cmpi eq, %arg1, %c0_i32_8 : i32
    %10 = arith.extui %9 : i1 to i32
    %c0_i32_9 = arith.constant 0 : i32
    %11 = arith.cmpi ne, %10, %c0_i32_9 : i32
    scf.if %11 {
      %c0_10 = arith.constant 0 : index
      %c0_11 = arith.constant 0 : index
      %12 = vector.load %arg6[%c0_10, %c0_11] : memref<8x64xf32, #tpu.memory_space<vmem>>, vector<8x64xf32>
      %13 = arith.mulf %12, %12 : vector<8x64xf32>
      %c0_12 = arith.constant 0 : index
      %c0_13 = arith.constant 0 : index
      %14 = vector.load %arg4[%c0_12, %c0_13] : memref<64x64xf32, #tpu.memory_space<vmem>>, vector<64x64xf32>
      %cst_14 = arith.constant dense<0.000000e+00> : vector<8x64xf32>
      %15 = tpu.matmul %13, %14, %cst_14 {dimension_numbers = #tpu.dot_dimension_numbers<[1], [0], [0], [1], [0, 0, 1, 1], [], []>} : vector<8x64xf32>, vector<64x64xf32>, vector<8x64xf32> -> vector<8x64xf32>
      %16 = math.sqrt %15 : vector<8x64xf32>
      %cst_15 = arith.constant 1.000000e-07 : f32
      %17 = vector.broadcast %cst_15 : f32 to vector<8x64xf32>
      %18 = arith.addf %16, %17 : vector<8x64xf32>
      %19 = arith.divf %12, %18 : vector<8x64xf32>
      %c0_16 = arith.constant 0 : index
      %c0_17 = arith.constant 0 : index
      %20 = vector.load %arg5[%c0_16, %c0_17] : memref<8x64xf32, #tpu.memory_space<vmem>>, vector<8x64xf32>
      tpu.vector_store %arg5[%c0_16, %c0_17], %19 {strides = array<i32>} : memref<8x64xf32, #tpu.memory_space<vmem>>, vector<8x64xf32>,
    } else {
    }
    return
  }
  func.func @transform_0(%arg0: i32, %arg1: i32) -> (i32, i32) {
    %c0_i32 = arith.constant 0 : i32
    return %arg0, %arg1 : i32, i32
  }
  func.func @transform_1(%arg0: i32, %arg1: i32) -> (i32, i32) {
    %c0_i32 = arith.constant 0 : i32
    %c0_i32_0 = arith.constant 0 : i32
    return %arg1, %c0_i32 : i32, i32
  }
  func.func @transform_2(%arg0: i32, %arg1: i32) -> (i32, i32) {
    %c0_i32 = arith.constant 0 : i32
    %c0_i32_0 = arith.constant 0 : i32
    %c0_i32_1 = arith.constant 0 : i32
    return %c0_i32, %c0_i32_0 : i32, i32
  }
  func.func @transform_3(%arg0: i32, %arg1: i32) -> (i32, i32) {
    %c0_i32 = arith.constant 0 : i32
    %c0_i32_0 = arith.constant 0 : i32
    return %arg0, %c0_i32 : i32, i32
  }
}

</mosaic_0001>

<bundles_post_ra>
// kernel: reshapef_forward.1
= control target key start
LH: loop header
LB: loop body
LE: loop exit
PB: predicated region body
PF: predicated region fallthrough
CT: control target
= control target key end

     0   :  { %vm1273_vm0 = vmmov 0   ;;  %vm18_vm1 = vcmask 523264   ;;  %s2117_s1 = inlined_call_operand.vmem [shape: f32[1920,64], index: 1, kind: input, shape index: {}]   ;;  %s2118_s0 = inlined_call_operand.vmem [shape: f32[8,1920], index: 0, kind: input, shape index: {}]   ;;  %s2119_s2 = inlined_call_operand.vmem [shape: f32[64,64], index: 2, kind: input, shape index: {}]   ;;  %s2120_s3 = inlined_call_operand.vmem [shape: f32[8,64], index: 3, kind: output, shape index: {}]  }
   0x1   :  { %v67_v0 = vld [vmem:[%s2117_s1 + $0xf8] sm:$0xff]  ;;  %v66_v4 = vld [vmem:[%s2117_s1 + $0xf0] sm:$0xff]  ;;  %v65_v8 = vld [vmem:[%s2117_s1 + $0xe8] sm:$0xff] }
   0x2   :  { %v99_v1 = vld [vmem:[%s2117_s1 + $0x1f8] sm:$0xff]  ;;  %941 = vmatprep.subr.mxu0 %v67_v0  ;;  %v98_v5 = vld [vmem:[%s2117_s1 + $0x1f0] sm:$0xff]  ;;  %v97_v9 = vld [vmem:[%s2117_s1 + $0x1e8] sm:$0xff] }
   0x3   :  { %v51_v2 = vld [vmem:[%s2117_s1 + $0x78] sm:$0xff]  ;;  %976 = vmatprep.subr.mxu1 %v99_v1  ;;  %v50_v6 = vld [vmem:[%s2117_s1 + $0x70] sm:$0xff]  ;;  %v49_v10 = vld [vmem:[%s2117_s1 + $0x68] sm:$0xff] }
   0x4   :  { %v83_v3 = vld [vmem:[%s2117_s1 + $0x178] sm:$0xff]  ;;  %942 = vmatpush3.msra.mxu0 %v51_v2  ;;  %v82_v7 = vld [vmem:[%s2117_s1 + $0x170] sm:$0xff]  ;;  %v81_v11 = vld [vmem:[%s2117_s1 + $0x168] sm:$0xff] }
   0x5   :  { %977 = vmatpush3.msra.mxu1 %v83_v3  ;;  %943 = vmatprep.subr.mxu0 %v66_v4  ;;  %v64_v12 = vld [vmem:[%s2117_s1 + $0xe0] sm:$0xff]  ;;  %v63_v16 = vld [vmem:[%s2117_s1 + $0xd8] sm:$0xff]  ;;  %v62_v20 = vld [vmem:[%s2117_s1 + $0xd0] sm:$0xff] }
   0x6   :  { %978 = vmatprep.subr.mxu1 %v98_v5  ;;  %944 = vmatpush3.msra.mxu0 %v50_v6  ;;  %v96_v13 = vld [vmem:[%s2117_s1 + $0x1e0] sm:$0xff]  ;;  %v95_v17 = vld [vmem:[%s2117_s1 + $0x1d8] sm:$0xff]  ;;  %v94_v21 = vld [vmem:[%s2117_s1 + $0x1d0] sm:$0xff] }
   0x7   :  { %979 = vmatpush3.msra.mxu1 %v82_v7  ;;  %945 = vmatprep.subr.mxu0 %v65_v8  ;;  %v48_v14 = vld [vmem:[%s2117_s1 + $0x60] sm:$0xff]  ;;  %v47_v18 = vld [vmem:[%s2117_s1 + $0x58] sm:$0xff]  ;;  %v46_v22 = vld [vmem:[%s2117_s1 + $0x50] sm:$0xff] }
   0x8   :  { %980 = vmatprep.subr.mxu1 %v97_v9  ;;  %v80_v15 = vld [vmem:[%s2117_s1 + $0x160] sm:$0xff]  ;;  %946 = vmatpush3.msra.mxu0 %v49_v10  ;;  %v79_v19 = vld [vmem:[%s2117_s1 + $0x158] sm:$0xff]  ;;  %v78_v23 = vld [vmem:[%s2117_s1 + $0x150] sm:$0xff] }
   0x9   :  { %981 = vmatpush3.msra.mxu1 %v81_v11  ;;  %947 = vmatprep.subr.mxu0 %v64_v12  ;;  %v61_v24 = vld [vmem:[%s2117_s1 + $0xc8] sm:$0xff]  ;;  %v60_v28 = vld [vmem:[%s2117_s1 + $0xc0] sm:$0xff]  ;;  %v59_v32 = vld [vmem:[%s2117_s1 + $0xb8] sm:$0xff] }
   0xa   :  { %982 = vmatprep.subr.mxu1 %v96_v13  ;;  %948 = vmatpush3.msra.mxu0 %v48_v14  ;;  %v93_v25 = vld [vmem:[%s2117_s1 + $0x1c8] sm:$0xff]  ;;  %v92_v29 = vld [vmem:[%s2117_s1 + $0x1c0] sm:$0xff]  ;;  %v91_v33 = vld [vmem:[%s2117_s1 + $0x1b8] sm:$0xff] }
   0xb   :  { %983 = vmatpush3.msra.mxu1 %v80_v15  ;;  %949 = vmatprep.subr.mxu0 %v63_v16  ;;  %v45_v26 = vld [vmem:[%s2117_s1 + $0x48] sm:$0xff]  ;;  %v44_v30 = vld [vmem:[%s2117_s1 + $0x40] sm:$0xff]  ;;  %v43_v34 = vld [vmem:[%s2117_s1 + $0x38] sm:$0xff] }
   0xc   :  { %984 = vmatprep.subr.mxu1 %v95_v17  ;;  %950 = vmatpush3.msra.mxu0 %v47_v18  ;;  %v77_v27 = vld [vmem:[%s2117_s1 + $0x148] sm:$0xff]  ;;  %v76_v31 = vld [vmem:[%s2117_s1 + $0x140] sm:$0xff]  ;;  %v75_v35 = vld [vmem:[%s2117_s1 + $0x138] sm:$0xff] }
   0xd   :  { %985 = vmatpush3.msra.mxu1 %v79_v19  ;;  %951 = vmatprep.subr.mxu0 %v62_v20  ;;  %v58_v36 = vld [vmem:[%s2117_s1 + $0xb0] sm:$0xff]  ;;  %v57_v40 = vld [vmem:[%s2117_s1 + $0xa8] sm:$0xff]  ;;  %v56_v44 = vld [vmem:[%s2117_s1 + $0xa0] sm:$0xff] }
   0xe   :  { %986 = vmatprep.subr.mxu1 %v94_v21  ;;  %952 = vmatpush3.msra.mxu0 %v46_v22  ;;  %v90_v37 = vld [vmem:[%s2117_s1 + $0x1b0] sm:$0xff]  ;;  %v89_v41 = vld [vmem:[%s2117_s1 + $0x1a8] sm:$0xff]  ;;  %v88_v45 = vld [vmem:[%s2117_s1 + $0x1a0] sm:$0xff] }
   0xf   :  { %987 = vmatpush3.msra.mxu1 %v78_v23  ;;  %953 = vmatprep.subr.mxu0 %v61_v24  ;;  %v42_v38 = vld [vmem:[%s2117_s1 + $0x30] sm:$0xff]  ;;  %v41_v42 = vld [vmem:[%s2117_s1 + $0x28] sm:$0xff]  ;;  %v40_v46 = vld [vmem:[%s2117_s1 + $0x20] sm:$0xff] }
  0x10   :  { %988 = vmatprep.subr.mxu1 %v93_v25  ;;  %954 = vmatpush3.msra.mxu0 %v45_v26  ;;  %v74_v39 = vld [vmem:[%s2117_s1 + $0x130] sm:$0xff]  ;;  %v73_v43 = vld [vmem:[%s2117_s1 + $0x128] sm:$0xff]  ;;  %v72_v47 = vld [vmem:[%s2117_s1 + $0x120] sm:$0xff] }
  0x11   :  { %989 = vmatpush3.msra.mxu1 %v77_v27  ;;  %955 = vmatprep.subr.mxu0 %v60_v28  ;;  %v55_v48 = vld [vmem:[%s2117_s1 + $0x98] sm:$0xff]  ;;  %v54_v52 = vld [vmem:[%s2117_s1 + $0x90] sm:$0xff]  ;;  %v53_v56 = vld [vmem:[%s2117_s1 + $0x88] sm:$0xff] }
  0x12   :  { %990 = vmatprep.subr.mxu1 %v92_v29  ;;  %956 = vmatpush3.msra.mxu0 %v44_v30  ;;  %v87_v49 = vld [vmem:[%s2117_s1 + $0x198] sm:$0xff]  ;;  %v86_v53 = vld [vmem:[%s2117_s1 + $0x190] sm:$0xff]  ;;  %v85_v57 = vld [vmem:[%s2117_s1 + $0x188] sm:$0xff] }
  0x13   :  { %991 = vmatpush3.msra.mxu1 %v76_v31  ;;  %957 = vmatprep.subr.mxu0 %v59_v32  ;;  %v39_v50 = vld [vmem:[%s2117_s1 + $0x18] sm:$0xff]  ;;  %v38_v54 = vld [vmem:[%s2117_s1 + $0x10] sm:$0xff]  ;;  %v37_v58 = vld [vmem:[%s2117_s1 + $0x8] sm:$0xff] }
  0x14   :  { %992 = vmatprep.subr.mxu1 %v91_v33  ;;  %958 = vmatpush3.msra.mxu0 %v43_v34  ;;  %v71_v51 = vld [vmem:[%s2117_s1 + $0x118] sm:$0xff]  ;;  %v70_v55 = vld [vmem:[%s2117_s1 + $0x110] sm:$0xff]  ;;  %v69_v59 = vld [vmem:[%s2117_s1 + $0x108] sm:$0xff] }
  0x15   :  { %993 = vmatpush3.msra.mxu1 %v75_v35  ;;  %959 = vmatprep.subr.mxu0 %v58_v36  ;;  %v52_v60 = vld [vmem:[%s2117_s1 + $0x80] sm:$0xff]  ;;  %v22_v63 = vld [vmem:[%s2118_s0 + $0x8] sm:$0xff]  ;;  %v24_v1 = vld [vmem:[%s2118_s0 + $0x18] sm:$0xff] }
  0x16   :  { %994 = vmatprep.subr.mxu1 %v90_v37  ;;  %960 = vmatpush3.msra.mxu0 %v42_v38  ;;  %v84_v61 = vld [vmem:[%s2117_s1 + $0x180] sm:$0xff]  ;;  %v23_v3 = vld [vmem:[%s2118_s0 + $0x10] sm:$0xff]  ;;  %v131_v4 = vld [vmem:[%s2117_s1 + $0x2f8] sm:$0xff] }
  0x17   :  { %995 = vmatpush3.msra.mxu1 %v74_v39  ;;  %961 = vmatprep.subr.mxu0 %v57_v40  ;;  %v36_v62 = vld [vmem:[%s2117_s1] sm:$0xff]  ;;  %v163_v5 = vld [vmem:[%s2117_s1 + $0x3f8] sm:$0xff]  ;;  %v130_v8 = vld [vmem:[%s2117_s1 + $0x2f0] sm:$0xff] }
  0x18   :  { %996 = vmatprep.subr.mxu1 %v89_v41  ;;  %962 = vmatpush3.msra.mxu0 %v41_v42  ;;  %v68_v0 = vld [vmem:[%s2117_s1 + $0x100] sm:$0xff]  ;;  %v115_v6 = vld [vmem:[%s2117_s1 + $0x278] sm:$0xff]  ;;  %v162_v9 = vld [vmem:[%s2117_s1 + $0x3f0] sm:$0xff] }
  0x19   :  { %997 = vmatpush3.msra.mxu1 %v73_v43  ;;  %963 = vmatprep.subr.mxu0 %v56_v44  ;;  %v21_v2 = vld [vmem:[%s2118_s0] sm:$0xff]  ;;  %v147_v7 = vld [vmem:[%s2117_s1 + $0x378] sm:$0xff]  ;;  %v114_v10 = vld [vmem:[%s2117_s1 + $0x270] sm:$0xff] }
  0x1a   :  { %998 = vmatprep.subr.mxu1 %v88_v45  ;;  %964 = vmatpush3.msra.mxu0 %v40_v46  ;;  %v146_v11 = vld [vmem:[%s2117_s1 + $0x370] sm:$0xff]  ;;  %v129_v12 = vld [vmem:[%s2117_s1 + $0x2e8] sm:$0xff]  ;;  %v128_v16 = vld [vmem:[%s2117_s1 + $0x2e0] sm:$0xff] }
  0x1b   :  { %999 = vmatpush3.msra.mxu1 %v72_v47  ;;  %965 = vmatprep.subr.mxu0 %v55_v48  ;;  %v161_v13 = vld [vmem:[%s2117_s1 + $0x3e8] sm:$0xff]  ;;  %v160_v17 = vld [vmem:[%s2117_s1 + $0x3e0] sm:$0xff]  ;;  %v127_v20 = vld [vmem:[%s2117_s1 + $0x2d8] sm:$0xff] }
  0x1c   :  { %1000 = vmatprep.subr.mxu1 %v87_v49  ;;  %966 = vmatpush3.msra.mxu0 %v39_v50  ;;  %v113_v14 = vld [vmem:[%s2117_s1 + $0x268] sm:$0xff]  ;;  %v112_v18 = vld [vmem:[%s2117_s1 + $0x260] sm:$0xff]  ;;  %v159_v21 = vld [vmem:[%s2117_s1 + $0x3d8] sm:$0xff] }
  0x1d   :  { %1001 = vmatpush3.msra.mxu1 %v71_v51  ;;  %967 = vmatprep.subr.mxu0 %v54_v52  ;;  %v145_v15 = vld [vmem:[%s2117_s1 + $0x368] sm:$0xff]  ;;  %v144_v19 = vld [vmem:[%s2117_s1 + $0x360] sm:$0xff]  ;;  %v111_v22 = vld [vmem:[%s2117_s1 + $0x258] sm:$0xff] }
  0x1e   :  { %1002 = vmatprep.subr.mxu1 %v86_v53  ;;  %968 = vmatpush3.msra.mxu0 %v38_v54  ;;  %v143_v23 = vld [vmem:[%s2117_s1 + $0x358] sm:$0xff]  ;;  %v126_v24 = vld [vmem:[%s2117_s1 + $0x2d0] sm:$0xff]  ;;  %v125_v28 = vld [vmem:[%s2117_s1 + $0x2c8] sm:$0xff] }
  0x1f   :  { %1003 = vmatpush3.msra.mxu1 %v70_v55  ;;  %969 = vmatprep.subr.mxu0 %v53_v56  ;;  %v158_v25 = vld [vmem:[%s2117_s1 + $0x3d0] sm:$0xff]  ;;  %v157_v29 = vld [vmem:[%s2117_s1 + $0x3c8] sm:$0xff]  ;;  %v124_v32 = vld [vmem:[%s2117_s1 + $0x2c0] sm:$0xff] }
  0x20   :  { %1004 = vmatprep.subr.mxu1 %v85_v57  ;;  %970 = vmatpush3.msra.mxu0 %v37_v58  ;;  %v110_v26 = vld [vmem:[%s2117_s1 + $0x250] sm:$0xff]  ;;  %v109_v30 = vld [vmem:[%s2117_s1 + $0x248] sm:$0xff]  ;;  %v156_v33 = vld [vmem:[%s2117_s1 + $0x3c0] sm:$0xff] }
  0x21   :  { %1005 = vmatpush3.msra.mxu1 %v69_v59  ;;  %971 = vmatprep.subr.mxu0 %v52_v60  ;;  %v142_v27 = vld [vmem:[%s2117_s1 + $0x350] sm:$0xff]  ;;  %v141_v31 = vld [vmem:[%s2117_s1 + $0x348] sm:$0xff]  ;;  %v108_v34 = vld [vmem:[%s2117_s1 + $0x240] sm:$0xff] }
  0x22   :  { %1006 = vmatprep.subr.mxu1 %v84_v61  ;;  %972 = vmatpush3.msra.mxu0 %v36_v62  ;;  %v140_v35 = vld [vmem:[%s2117_s1 + $0x340] sm:$0xff]  ;;  %v123_v36 = vld [vmem:[%s2117_s1 + $0x2b8] sm:$0xff]  ;;  %v122_v40 = vld [vmem:[%s2117_s1 + $0x2b0] sm:$0xff] }
  0x23   :  { %340 = vmatprep.mubr.f32.mxu0 %v22_v63  ;;  %1007 = vmatpush3.msra.mxu1 %v68_v0  ;;  %v155_v37 = vld [vmem:[%s2117_s1 + $0x3b8] sm:$0xff]  ;;  %v154_v41 = vld [vmem:[%s2117_s1 + $0x3b0] sm:$0xff]  ;;  %v121_v44 = vld [vmem:[%s2117_s1 + $0x2a8] sm:$0xff] }
  0x24   :  { %410 = vmatprep.mubr.f32.mxu1 %v24_v1  ;;  %341 = vmatmul.mubr.f32.vlgmr.msra.gmra.mxu0 %v21_v2  ;;  %v107_v38 = vld [vmem:[%s2117_s1 + $0x238] sm:$0xff]  ;;  %v106_v42 = vld [vmem:[%s2117_s1 + $0x230] sm:$0xff]  ;;  %v153_v45 = vld [vmem:[%s2117_s1 + $0x3a8] sm:$0xff] }
  0x25   :  { %411 = vmatmul.mubr.f32.vlgmr.msra.gmra.mxu1 %v23_v3  ;;  %1011 = vmatprep.subr.mxu0 %v131_v4  ;;  %v139_v39 = vld [vmem:[%s2117_s1 + $0x338] sm:$0xff]  ;;  %v138_v43 = vld [vmem:[%s2117_s1 + $0x330] sm:$0xff]  ;;  %v105_v46 = vld [vmem:[%s2117_s1 + $0x228] sm:$0xff] }
  0x26   :  { %1046 = vmatprep.subr.mxu1 %v163_v5  ;;  %1012 = vmatpush3.msra.mxu0 %v115_v6  ;;  %v137_v47 = vld [vmem:[%s2117_s1 + $0x328] sm:$0xff]  ;;  %v120_v48 = vld [vmem:[%s2117_s1 + $0x2a0] sm:$0xff]  ;;  %v119_v52 = vld [vmem:[%s2117_s1 + $0x298] sm:$0xff] }
  0x27   :  { %1047 = vmatpush3.msra.mxu1 %v147_v7  ;;  %1013 = vmatprep.subr.mxu0 %v130_v8  ;;  %v152_v49 = vld [vmem:[%s2117_s1 + $0x3a0] sm:$0xff]  ;;  %v151_v53 = vld [vmem:[%s2117_s1 + $0x398] sm:$0xff]  ;;  %v118_v56 = vld [vmem:[%s2117_s1 + $0x290] sm:$0xff] }
  0x28   :  { %1048 = vmatprep.subr.mxu1 %v162_v9  ;;  %1014 = vmatpush3.msra.mxu0 %v114_v10  ;;  %v104_v50 = vld [vmem:[%s2117_s1 + $0x220] sm:$0xff]  ;;  %v103_v54 = vld [vmem:[%s2117_s1 + $0x218] sm:$0xff]  ;;  %v150_v57 = vld [vmem:[%s2117_s1 + $0x390] sm:$0xff] }
  0x29   :  { %1049 = vmatpush3.msra.mxu1 %v146_v11  ;;  %1015 = vmatprep.subr.mxu0 %v129_v12  ;;  %v136_v51 = vld [vmem:[%s2117_s1 + $0x320] sm:$0xff]  ;;  %v135_v55 = vld [vmem:[%s2117_s1 + $0x318] sm:$0xff]  ;;  %v102_v58 = vld [vmem:[%s2117_s1 + $0x210] sm:$0xff] }
  0x2a   :  { %1050 = vmatprep.subr.mxu1 %v161_v13  ;;  %1016 = vmatpush3.msra.mxu0 %v113_v14  ;;  %v134_v59 = vld [vmem:[%s2117_s1 + $0x310] sm:$0xff]  ;;  %v117_v60 = vld [vmem:[%s2117_s1 + $0x288] sm:$0xff]  ;;  %v116_v0 = vld [vmem:[%s2117_s1 + $0x280] sm:$0xff] }
  0x2b   :  { %1051 = vmatpush3.msra.mxu1 %v145_v15  ;;  %1017 = vmatprep.subr.mxu0 %v128_v16  ;;  %v149_v61 = vld [vmem:[%s2117_s1 + $0x388] sm:$0xff]  ;;  %v100_v2 = vld [vmem:[%s2117_s1 + $0x200] sm:$0xff]  ;;  %v195_v5 = vld [vmem:[%s2117_s1 + $0x4f8] sm:$0xff] }
  0x2c   :  { %1052 = vmatprep.subr.mxu1 %v160_v17  ;;  %1018 = vmatpush3.msra.mxu0 %v112_v18  ;;  %v101_v62 = vld [vmem:[%s2117_s1 + $0x208] sm:$0xff]  ;;  %v148_v3 = vld [vmem:[%s2117_s1 + $0x380] sm:$0xff]  ;;  %v28_v7 = vld [vmem:[%s2118_s0 + $0x38] sm:$0xff] }
  0x2d   :  { %1053 = vmatpush3.msra.mxu1 %v144_v19  ;;  %1019 = vmatprep.subr.mxu0 %v127_v20  ;;  %v26_v63 = vld [vmem:[%s2118_s0 + $0x28] sm:$0xff]  ;;  %v25_v4 = vld [vmem:[%s2118_s0 + $0x20] sm:$0xff]  ;;  %v179_v8 = vld [vmem:[%s2117_s1 + $0x478] sm:$0xff] }
  0x2e   :  { %1054 = vmatprep.subr.mxu1 %v159_v21  ;;  %1020 = vmatpush3.msra.mxu0 %v111_v22  ;;  %v133_v1 = vld [vmem:[%s2117_s1 + $0x308] sm:$0xff]  ;;  %v132_v6 = vld [vmem:[%s2117_s1 + $0x300] sm:$0xff]  ;;  %v27_v9 = vld [vmem:[%s2118_s0 + $0x30] sm:$0xff] }
  0x2f   :  { %1055 = vmatpush3.msra.mxu1 %v143_v23  ;;  %1021 = vmatprep.subr.mxu0 %v126_v24  ;;  %v194_v10 = vld [vmem:[%s2117_s1 + $0x4f0] sm:$0xff]  ;;  %v227_v11 = vld [vmem:[%s2117_s1 + $0x5f8] sm:$0xff]  ;;  %v193_v14 = vld [vmem:[%s2117_s1 + $0x4e8] sm:$0xff] }
  0x30   :  { %1056 = vmatprep.subr.mxu1 %v158_v25  ;;  %1022 = vmatpush3.msra.mxu0 %v110_v26  ;;  %v178_v12 = vld [vmem:[%s2117_s1 + $0x470] sm:$0xff]  ;;  %v211_v13 = vld [vmem:[%s2117_s1 + $0x578] sm:$0xff]  ;;  %v177_v16 = vld [vmem:[%s2117_s1 + $0x468] sm:$0xff] }
  0x31   :  { %1057 = vmatpush3.msra.mxu1 %v142_v27  ;;  %1023 = vmatprep.subr.mxu0 %v125_v28  ;;  %v226_v15 = vld [vmem:[%s2117_s1 + $0x5f0] sm:$0xff]  ;;  %v192_v18 = vld [vmem:[%s2117_s1 + $0x4e0] sm:$0xff]  ;;  %v225_v19 = vld [vmem:[%s2117_s1 + $0x5e8] sm:$0xff] }
  0x32   :  { %1058 = vmatprep.subr.mxu1 %v157_v29  ;;  %1024 = vmatpush3.msra.mxu0 %v109_v30  ;;  %v210_v17 = vld [vmem:[%s2117_s1 + $0x570] sm:$0xff]  ;;  %v176_v20 = vld [vmem:[%s2117_s1 + $0x460] sm:$0xff]  ;;  %v209_v21 = vld [vmem:[%s2117_s1 + $0x568] sm:$0xff] }
  0x33   :  { %1059 = vmatpush3.msra.mxu1 %v141_v31  ;;  %1025 = vmatprep.subr.mxu0 %v124_v32  ;;  %v191_v22 = vld [vmem:[%s2117_s1 + $0x4d8] sm:$0xff]  ;;  %v224_v23 = vld [vmem:[%s2117_s1 + $0x5e0] sm:$0xff]  ;;  %v190_v26 = vld [vmem:[%s2117_s1 + $0x4d0] sm:$0xff] }
  0x34   :  { %1060 = vmatprep.subr.mxu1 %v156_v33  ;;  %1026 = vmatpush3.msra.mxu0 %v108_v34  ;;  %v175_v24 = vld [vmem:[%s2117_s1 + $0x458] sm:$0xff]  ;;  %v208_v25 = vld [vmem:[%s2117_s1 + $0x560] sm:$0xff]  ;;  %v174_v28 = vld [vmem:[%s2117_s1 + $0x450] sm:$0xff] }
  0x35   :  { %1061 = vmatpush3.msra.mxu1 %v140_v35  ;;  %1027 = vmatprep.subr.mxu0 %v123_v36  ;;  %v223_v27 = vld [vmem:[%s2117_s1 + $0x5d8] sm:$0xff]  ;;  %v189_v30 = vld [vmem:[%s2117_s1 + $0x4c8] sm:$0xff]  ;;  %v222_v31 = vld [vmem:[%s2117_s1 + $0x5d0] sm:$0xff] }
  0x36   :  { %1062 = vmatprep.subr.mxu1 %v155_v37  ;;  %1028 = vmatpush3.msra.mxu0 %v107_v38  ;;  %v207_v29 = vld [vmem:[%s2117_s1 + $0x558] sm:$0xff]  ;;  %v173_v32 = vld [vmem:[%s2117_s1 + $0x448] sm:$0xff]  ;;  %v206_v33 = vld [vmem:[%s2117_s1 + $0x550] sm:$0xff] }
  0x37   :  { %1063 = vmatpush3.msra.mxu1 %v139_v39  ;;  %1029 = vmatprep.subr.mxu0 %v122_v40  ;;  %v188_v34 = vld [vmem:[%s2117_s1 + $0x4c0] sm:$0xff]  ;;  %v221_v35 = vld [vmem:[%s2117_s1 + $0x5c8] sm:$0xff]  ;;  %v187_v38 = vld [vmem:[%s2117_s1 + $0x4b8] sm:$0xff] }
  0x38   :  { %1064 = vmatprep.subr.mxu1 %v154_v41  ;;  %1030 = vmatpush3.msra.mxu0 %v106_v42  ;;  %v172_v36 = vld [vmem:[%s2117_s1 + $0x440] sm:$0xff]  ;;  %v205_v37 = vld [vmem:[%s2117_s1 + $0x548] sm:$0xff]  ;;  %v171_v40 = vld [vmem:[%s2117_s1 + $0x438] sm:$0xff] }
  0x39   :  { %1065 = vmatpush3.msra.mxu1 %v138_v43  ;;  %1031 = vmatprep.subr.mxu0 %v121_v44  ;;  %v220_v39 = vld [vmem:[%s2117_s1 + $0x5c0] sm:$0xff]  ;;  %v186_v42 = vld [vmem:[%s2117_s1 + $0x4b0] sm:$0xff]  ;;  %v219_v43 = vld [vmem:[%s2117_s1 + $0x5b8] sm:$0xff] }
  0x3a   :  { %1066 = vmatprep.subr.mxu1 %v153_v45  ;;  %1032 = vmatpush3.msra.mxu0 %v105_v46  ;;  %v204_v41 = vld [vmem:[%s2117_s1 + $0x540] sm:$0xff]  ;;  %v170_v44 = vld [vmem:[%s2117_s1 + $0x430] sm:$0xff]  ;;  %v203_v45 = vld [vmem:[%s2117_s1 + $0x538] sm:$0xff] }
  0x3b   :  { %1067 = vmatpush3.msra.mxu1 %v137_v47  ;;  %1033 = vmatprep.subr.mxu0 %v120_v48  ;;  %v185_v46 = vld [vmem:[%s2117_s1 + $0x4a8] sm:$0xff]  ;;  %v218_v47 = vld [vmem:[%s2117_s1 + $0x5b0] sm:$0xff] }
  0x3c   :  { %1068 = vmatprep.subr.mxu1 %v152_v49  ;;  %1034 = vmatpush3.msra.mxu0 %v104_v50  ;;  %v169_v48 = vld [vmem:[%s2117_s1 + $0x428] sm:$0xff]  ;;  %v202_v49 = vld [vmem:[%s2117_s1 + $0x530] sm:$0xff]  ;;  %v184_v50 = vld [vmem:[%s2117_s1 + $0x4a0] sm:$0xff] }
  0x3d   :  { %1069 = vmatpush3.msra.mxu1 %v136_v51  ;;  %1035 = vmatprep.subr.mxu0 %v119_v52  ;;  %v217_v51 = vld [vmem:[%s2117_s1 + $0x5a8] sm:$0xff]  ;;  %v168_v52 = vld [vmem:[%s2117_s1 + $0x420] sm:$0xff] }
  0x3e   :  { %1070 = vmatprep.subr.mxu1 %v151_v53  ;;  %1036 = vmatpush3.msra.mxu0 %v103_v54  ;;  %v201_v53 = vld [vmem:[%s2117_s1 + $0x528] sm:$0xff]  ;;  %v183_v54 = vld [vmem:[%s2117_s1 + $0x498] sm:$0xff] }
  0x3f   :  { %1071 = vmatpush3.msra.mxu1 %v135_v55  ;;  %1037 = vmatprep.subr.mxu0 %v118_v56  ;;  %v216_v55 = vld [vmem:[%s2117_s1 + $0x5a0] sm:$0xff]  ;;  %v167_v56 = vld [vmem:[%s2117_s1 + $0x418] sm:$0xff] }
  0x40   :  { %1072 = vmatprep.subr.mxu1 %v150_v57  ;;  %1038 = vmatpush3.msra.mxu0 %v102_v58  ;;  %v200_v57 = vld [vmem:[%s2117_s1 + $0x520] sm:$0xff]  ;;  %v182_v58 = vld [vmem:[%s2117_s1 + $0x490] sm:$0xff] }
  0x41   :  { %1073 = vmatpush3.msra.mxu1 %v134_v59  ;;  %1039 = vmatprep.subr.mxu0 %v117_v60  ;;  %v215_v59 = vld [vmem:[%s2117_s1 + $0x598] sm:$0xff]  ;;  %v166_v60 = vld [vmem:[%s2117_s1 + $0x410] sm:$0xff] }
  0x42   :  { %1074 = vmatprep.subr.mxu1 %v149_v61  ;;  %1040 = vmatpush3.msra.mxu0 %v101_v62  ;;  %v199_v61 = vld [vmem:[%s2117_s1 + $0x518] sm:$0xff]  ;;  %v181_v62 = vld [vmem:[%s2117_s1 + $0x488] sm:$0xff] }
  0x43   :  { %480 = vmatprep.mubr.f32.mxu0 %v26_v63  ;;  %1041 = vmatprep.subr.mxu0 %v116_v0  ;;  %v214_v63 = vld [vmem:[%s2117_s1 + $0x590] sm:$0xff]  ;;  %v165_v0 = vld [vmem:[%s2117_s1 + $0x408] sm:$0xff] }
  0x44   :  { %1075 = vmatpush3.msra.mxu1 %v133_v1  ;;  %1042 = vmatpush3.msra.mxu0 %v100_v2  ;;  %v198_v1 = vld [vmem:[%s2117_s1 + $0x510] sm:$0xff]  ;;  %v180_v2 = vld [vmem:[%s2117_s1 + $0x480] sm:$0xff] }
  0x45   :  { %1076 = vmatprep.subr.mxu1 %v148_v3  ;;  %481 = vmatmul.mubr.f32.vlgmr.msra.gmra.mxu0 %v25_v4  ;;  %v213_v3 = vld [vmem:[%s2117_s1 + $0x588] sm:$0xff]  ;;  %v164_v4 = vld [vmem:[%s2117_s1 + $0x400] sm:$0xff] }
  0x46   :  { %1081 = vmatprep.subr.mxu0 %v195_v5  ;;  %1077 = vmatpush3.msra.mxu1 %v132_v6  ;;  %v30_v5 = vld [vmem:[%s2118_s0 + $0x48] sm:$0xff] }
  0x47   :  { %550 = vmatprep.mubr.f32.mxu1 %v28_v7  ;;  %1082 = vmatpush3.msra.mxu0 %v179_v8  ;;  %v197_v6 = vld [vmem:[%s2117_s1 + $0x508] sm:$0xff]  ;;  %v29_v7 = vld [vmem:[%s2118_s0 + $0x40] sm:$0xff] }
  0x48   :  { %551 = vmatmul.mubr.f32.vlgmr.msra.gmra.mxu1 %v27_v9  ;;  %1083 = vmatprep.subr.mxu0 %v194_v10  ;;  %v212_v8 = vld [vmem:[%s2117_s1 + $0x580] sm:$0xff]  ;;  %v259_v9 = vld [vmem:[%s2117_s1 + $0x6f8] sm:$0xff] }
  0x49   :  { %1116 = vmatprep.subr.mxu1 %v227_v11  ;;  %1084 = vmatpush3.msra.mxu0 %v178_v12  ;;  %v196_v10 = vld [vmem:[%s2117_s1 + $0x500] sm:$0xff]  ;;  %v32_v11 = vld [vmem:[%s2118_s0 + $0x58] sm:$0xff] }
  0x4a   :  { %1117 = vmatpush3.msra.mxu1 %v211_v13  ;;  %1085 = vmatprep.subr.mxu0 %v193_v14  ;;  %v243_v12 = vld [vmem:[%s2117_s1 + $0x678] sm:$0xff]  ;;  %v31_v13 = vld [vmem:[%s2118_s0 + $0x50] sm:$0xff] }
  0x4b   :  { %1118 = vmatprep.subr.mxu1 %v226_v15  ;;  %1086 = vmatpush3.msra.mxu0 %v177_v16  ;;  %v258_v14 = vld [vmem:[%s2117_s1 + $0x6f0] sm:$0xff]  ;;  %v275_v16 = vld [vmem:[%s2117_s1 + $0x778] sm:$0xff] }
  0x4c   :  { %1119 = vmatpush3.msra.mxu1 %v210_v17  ;;  %1087 = vmatprep.subr.mxu0 %v192_v18  ;;  %v242_v15 = vld [vmem:[%s2117_s1 + $0x670] sm:$0xff]  ;;  %v257_v17 = vld [vmem:[%s2117_s1 + $0x6e8] sm:$0xff]  ;;  %v1272_v18 = vmov 0.0  }
  0x4d   :  { %1120 = vmatprep.subr.mxu1 %v225_v19  ;;  %1088 = vmatpush3.msra.mxu0 %v176_v20  ;;  %v241_v19 = vld [vmem:[%s2117_s1 + $0x668] sm:$0xff]  ;;  %v274_v20 = vld [vmem:[%s2117_s1 + $0x770] sm:$0xff]  ;;  %19 = vst.msk [vmem:[#allocation2] sm:$0xff] %vm18_vm1, %v1272_v18 }
  0x4e   :  { %1121 = vmatpush3.msra.mxu1 %v209_v21  ;;  %1089 = vmatprep.subr.mxu0 %v191_v22  ;;  %v256_v21 = vld [vmem:[%s2117_s1 + $0x6e0] sm:$0xff] }
  0x4f   :  { %1122 = vmatprep.subr.mxu1 %v224_v23  ;;  %1090 = vmatpush3.msra.mxu0 %v175_v24  ;;  %v240_v22 = vld [vmem:[%s2117_s1 + $0x660] sm:$0xff]  ;;  %v273_v23 = vld [vmem:[%s2117_s1 + $0x768] sm:$0xff]  ;;  %v255_v24 = vld [vmem:[%s2117_s1 + $0x6d8] sm:$0xff] }
  0x50   :  { %1123 = vmatpush3.msra.mxu1 %v208_v25  ;;  %1091 = vmatprep.subr.mxu0 %v190_v26  ;;  %v239_v25 = vld [vmem:[%s2117_s1 + $0x658] sm:$0xff]  ;;  %v272_v26 = vld [vmem:[%s2117_s1 + $0x760] sm:$0xff] }
  0x51   :  { %1124 = vmatprep.subr.mxu1 %v223_v27  ;;  %1092 = vmatpush3.msra.mxu0 %v174_v28  ;;  %v254_v27 = vld [vmem:[%s2117_s1 + $0x6d0] sm:$0xff] }
  0x52   :  { %1125 = vmatpush3.msra.mxu1 %v207_v29  ;;  %1093 = vmatprep.subr.mxu0 %v189_v30  ;;  %v238_v28 = vld [vmem:[%s2117_s1 + $0x650] sm:$0xff]  ;;  %v271_v29 = vld [vmem:[%s2117_s1 + $0x758] sm:$0xff]  ;;  %v253_v30 = vld [vmem:[%s2117_s1 + $0x6c8] sm:$0xff] }
  0x53   :  { %1126 = vmatprep.subr.mxu1 %v222_v31  ;;  %1094 = vmatpush3.msra.mxu0 %v173_v32  ;;  %v237_v31 = vld [vmem:[%s2117_s1 + $0x648] sm:$0xff]  ;;  %v270_v32 = vld [vmem:[%s2117_s1 + $0x750] sm:$0xff] }
  0x54   :  { %1127 = vmatpush3.msra.mxu1 %v206_v33  ;;  %1095 = vmatprep.subr.mxu0 %v188_v34  ;;  %v252_v33 = vld [vmem:[%s2117_s1 + $0x6c0] sm:$0xff] }
  0x55   :  { %1128 = vmatprep.subr.mxu1 %v221_v35  ;;  %1096 = vmatpush3.msra.mxu0 %v172_v36  ;;  %v236_v34 = vld [vmem:[%s2117_s1 + $0x640] sm:$0xff]  ;;  %v269_v35 = vld [vmem:[%s2117_s1 + $0x748] sm:$0xff]  ;;  %v251_v36 = vld [vmem:[%s2117_s1 + $0x6b8] sm:$0xff] }
  0x56   :  { %1129 = vmatpush3.msra.mxu1 %v205_v37  ;;  %1097 = vmatprep.subr.mxu0 %v187_v38  ;;  %v235_v37 = vld [vmem:[%s2117_s1 + $0x638] sm:$0xff]  ;;  %v268_v38 = vld [vmem:[%s2117_s1 + $0x740] sm:$0xff] }
  0x57   :  { %1130 = vmatprep.subr.mxu1 %v220_v39  ;;  %1098 = vmatpush3.msra.mxu0 %v171_v40  ;;  %v250_v39 = vld [vmem:[%s2117_s1 + $0x6b0] sm:$0xff] }
  0x58   :  { %1131 = vmatpush3.msra.mxu1 %v204_v41  ;;  %1099 = vmatprep.subr.mxu0 %v186_v42  ;;  %v234_v40 = vld [vmem:[%s2117_s1 + $0x630] sm:$0xff]  ;;  %v267_v41 = vld [vmem:[%s2117_s1 + $0x738] sm:$0xff]  ;;  %v249_v42 = vld [vmem:[%s2117_s1 + $0x6a8] sm:$0xff] }
  0x59   :  { %1132 = vmatprep.subr.mxu1 %v219_v43  ;;  %1100 = vmatpush3.msra.mxu0 %v170_v44  ;;  %v233_v43 = vld [vmem:[%s2117_s1 + $0x628] sm:$0xff]  ;;  %v266_v44 = vld [vmem:[%s2117_s1 + $0x730] sm:$0xff] }
  0x5a   :  { %1133 = vmatpush3.msra.mxu1 %v203_v45  ;;  %1101 = vmatprep.subr.mxu0 %v185_v46  ;;  %v248_v45 = vld [vmem:[%s2117_s1 + $0x6a0] sm:$0xff] }
  0x5b   :  { %1134 = vmatprep.subr.mxu1 %v218_v47  ;;  %1102 = vmatpush3.msra.mxu0 %v169_v48  ;;  %v232_v46 = vld [vmem:[%s2117_s1 + $0x620] sm:$0xff]  ;;  %v265_v47 = vld [vmem:[%s2117_s1 + $0x728] sm:$0xff]  ;;  %v247_v48 = vld [vmem:[%s2117_s1 + $0x698] sm:$0xff] }
  0x5c   :  { %1135 = vmatpush3.msra.mxu1 %v202_v49  ;;  %1103 = vmatprep.subr.mxu0 %v184_v50  ;;  %v231_v49 = vld [vmem:[%s2117_s1 + $0x618] sm:$0xff]  ;;  %v264_v50 = vld [vmem:[%s2117_s1 + $0x720] sm:$0xff] }
  0x5d   :  { %1136 = vmatprep.subr.mxu1 %v217_v51  ;;  %1104 = vmatpush3.msra.mxu0 %v168_v52  ;;  %v246_v51 = vld [vmem:[%s2117_s1 + $0x690] sm:$0xff] }
  0x5e   :  { %1137 = vmatpush3.msra.mxu1 %v201_v53  ;;  %1105 = vmatprep.subr.mxu0 %v183_v54  ;;  %v230_v52 = vld [vmem:[%s2117_s1 + $0x610] sm:$0xff]  ;;  %v263_v53 = vld [vmem:[%s2117_s1 + $0x718] sm:$0xff]  ;;  %v245_v54 = vld [vmem:[%s2117_s1 + $0x688] sm:$0xff] }
  0x5f   :  { %1138 = vmatprep.subr.mxu1 %v216_v55  ;;  %1106 = vmatpush3.msra.mxu0 %v167_v56  ;;  %v229_v55 = vld [vmem:[%s2117_s1 + $0x608] sm:$0xff] }
  0x60   :  { %1139 = vmatpush3.msra.mxu1 %v200_v57  ;;  %1107 = vmatprep.subr.mxu0 %v182_v58  ;;  %v34_v56 = vld [vmem:[%s2118_s0 + $0x68] sm:$0xff]  ;;  %v244_v57 = vld [vmem:[%s2117_s1 + $0x680] sm:$0xff]  ;;  %v262_v58 = vld [vmem:[%s2117_s1 + $0x710] sm:$0xff] }
  0x61   :  { %1140 = vmatprep.subr.mxu1 %v215_v59  ;;  %1108 = vmatpush3.msra.mxu0 %v166_v60  ;;  %v228_v59 = vld [vmem:[%s2117_s1 + $0x600] sm:$0xff] }
  0x62   :  { %1141 = vmatpush3.msra.mxu1 %v199_v61  ;;  %1109 = vmatprep.subr.mxu0 %v181_v62  ;;  %v33_v60 = vld [vmem:[%s2118_s0 + $0x60] sm:$0xff]  ;;  %v261_v61 = vld [vmem:[%s2117_s1 + $0x708] sm:$0xff] }
  0x63   :  { %1142 = vmatprep.subr.mxu1 %v214_v63  ;;  %1110 = vmatpush3.msra.mxu0 %v165_v0  ;;  %v260_v62 = vld [vmem:[%s2117_s1 + $0x700] sm:$0xff]  ;;  %v35_v63 = vld [vmem:[%s2118_s0 + $0x70] sm:$0xff]  ;;  %v851_v0 = vld [vmem:[%s2119_s2 + $0x38] sm:$0xff] }
  0x64   :  { %1143 = vmatpush3.msra.mxu1 %v198_v1  ;;  %1111 = vmatprep.subr.mxu0 %v180_v2  ;;  %v850_v1 = vld [vmem:[%s2119_s2 + $0x30] sm:$0xff]  ;;  %v849_v2 = vld [vmem:[%s2119_s2 + $0x28] sm:$0xff] }
  0x65   :  { %1144 = vmatprep.subr.mxu1 %v213_v3  ;;  %1112 = vmatpush3.msra.mxu0 %v164_v4  ;;  %v848_v3 = vld [vmem:[%s2119_s2 + $0x20] sm:$0xff]  ;;  %v847_v4 = vld [vmem:[%s2119_s2 + $0x18] sm:$0xff] }
  0x66   :  { %620 = vmatprep.mubr.f32.mxu0 %v30_v5  ;;  %1145 = vmatpush3.msra.mxu1 %v197_v6  ;;  %v846_v5 = vld [vmem:[%s2119_s2 + $0x10] sm:$0xff]  ;;  %v845_v6 = vld [vmem:[%s2119_s2 + $0x8] sm:$0xff] }
  0x67   :  { %621 = vmatmul.mubr.f32.vlgmr.msra.gmra.mxu0 %v29_v7  ;;  %1146 = vmatprep.subr.mxu1 %v212_v8  ;;  %v844_v7 = vld [vmem:[%s2119_s2] sm:$0xff] }
  0x68   :  { %1151 = vmatprep.subr.mxu0 %v259_v9  ;;  %1147 = vmatpush3.msra.mxu1 %v196_v10 }
  0x69   :  { %690 = vmatprep.mubr.f32.mxu1 %v32_v11  ;;  %1152 = vmatpush3.msra.mxu0 %v243_v12 }
  0x6a   :  { %691 = vmatmul.mubr.f32.vlgmr.msra.gmra.mxu1 %v31_v13  ;;  %1153 = vmatprep.subr.mxu0 %v258_v14 }
  0x6b   :  { %1212 = vmatprep.subr.mxu1 %v1272_v18  ;;  %1154 = vmatpush3.msra.mxu0 %v242_v15 }
  0x6c   :  { %1213 = vmatpush3.msra.mxu1 %v275_v16  ;;  %1155 = vmatprep.subr.mxu0 %v257_v17 }
  0x6d   :  { %1214 = vmatprep.subr.mxu1 %v1272_v18  ;;  %1156 = vmatpush3.msra.mxu0 %v241_v19 }
  0x6e   :  { %1215 = vmatpush3.msra.mxu1 %v274_v20  ;;  %1157 = vmatprep.subr.mxu0 %v256_v21 }
  0x6f   :  { %1216 = vmatprep.subr.mxu1 %v1272_v18  ;;  %1158 = vmatpush3.msra.mxu0 %v240_v22 }
  0x70   :  { %1217 = vmatpush3.msra.mxu1 %v273_v23  ;;  %1159 = vmatprep.subr.mxu0 %v255_v24 }
  0x71   :  { %1218 = vmatprep.subr.mxu1 %v1272_v18  ;;  %1160 = vmatpush3.msra.mxu0 %v239_v25 }
  0x72   :  { %1219 = vmatpush3.msra.mxu1 %v272_v26  ;;  %1161 = vmatprep.subr.mxu0 %v254_v27 }
  0x73   :  { %1220 = vmatprep.subr.mxu1 %v1272_v18  ;;  %1162 = vmatpush3.msra.mxu0 %v238_v28 }
  0x74   :  { %1221 = vmatpush3.msra.mxu1 %v271_v29  ;;  %1163 = vmatprep.subr.mxu0 %v253_v30 }
  0x75   :  { %1222 = vmatprep.subr.mxu1 %v1272_v18  ;;  %1164 = vmatpush3.msra.mxu0 %v237_v31 }
  0x76   :  { %1223 = vmatpush3.msra.mxu1 %v270_v32  ;;  %1165 = vmatprep.subr.mxu0 %v252_v33 }
  0x77   :  { %1224 = vmatprep.subr.mxu1 %v1272_v18  ;;  %1166 = vmatpush3.msra.mxu0 %v236_v34 }
  0x78   :  { %1225 = vmatpush3.msra.mxu1 %v269_v35  ;;  %1167 = vmatprep.subr.mxu0 %v251_v36 }
  0x79   :  { %1226 = vmatprep.subr.mxu1 %v1272_v18  ;;  %1168 = vmatpush3.msra.mxu0 %v235_v37  ;;  %v20_v37 = vld [vmem:[#allocation2] sm:$0xff] }
  0x7a   :  { %1227 = vmatpush3.msra.mxu1 %v268_v38  ;;  %1169 = vmatprep.subr.mxu0 %v250_v39 }
  0x7b   :  { %1228 = vmatprep.subr.mxu1 %v1272_v18  ;;  %1170 = vmatpush3.msra.mxu0 %v234_v40 }
  0x7c   :  { %1229 = vmatpush3.msra.mxu1 %v267_v41  ;;  %1171 = vmatprep.subr.mxu0 %v249_v42 }
  0x7d   :  { %1230 = vmatprep.subr.mxu1 %v1272_v18  ;;  %1172 = vmatpush3.msra.mxu0 %v233_v43 }
  0x7e   :  { %1231 = vmatpush3.msra.mxu1 %v266_v44  ;;  %1173 = vmatprep.subr.mxu0 %v248_v45 }
  0x7f   :  { %1232 = vmatprep.subr.mxu1 %v1272_v18  ;;  %1174 = vmatpush3.msra.mxu0 %v232_v46 }
  0x80   :  { %1233 = vmatpush3.msra.mxu1 %v265_v47  ;;  %1175 = vmatprep.subr.mxu0 %v247_v48 }
  0x81   :  { %1234 = vmatprep.subr.mxu1 %v1272_v18  ;;  %1176 = vmatpush3.msra.mxu0 %v231_v49 }
  0x82   :  { %1235 = vmatpush3.msra.mxu1 %v264_v50  ;;  %1177 = vmatprep.subr.mxu0 %v246_v51 }
  0x83   :  { %1236 = vmatprep.subr.mxu1 %v1272_v18  ;;  %1178 = vmatpush3.msra.mxu0 %v230_v52 }
  0x84   :  { %1237 = vmatpush3.msra.mxu1 %v263_v53  ;;  %1179 = vmatprep.subr.mxu0 %v245_v54 }
  0x85   :  { %1238 = vmatprep.subr.mxu1 %v1272_v18  ;;  %1180 = vmatpush3.msra.mxu0 %v229_v55 }
  0x86   :  { %760 = vmatprep.mubr.f32.mxu0 %v34_v56  ;;  %1181 = vmatprep.subr.mxu0 %v244_v57 }
  0x87   :  { %1239 = vmatpush3.msra.mxu1 %v262_v58  ;;  %1182 = vmatpush3.msra.mxu0 %v228_v59 }
  0x88   :  { %1240 = vmatprep.subr.mxu1 %v1272_v18  ;;  %761 = vmatmul.mubr.f32.vlgmr.msra.gmra.mxu0 %v33_v60 }
  0x89   :  { %1241 = vmatpush3.msra.mxu1 %v261_v61  ;;  %1244 = vmatprep.mubr.msk.f32.mxu1 %vm1273_vm0, %v1272_v18 }
  0x8a   :  { %1242 = vmatprep.subr.mxu1 %v1272_v18  ;;  %1247 = vmatprep.subr.mxu0 %v1272_v18 }
  0x8b   :  { %1243 = vmatpush3.msra.mxu1 %v260_v62  ;;  %1263 = vmatprep.mubr.msk.f32.mxu0 %vm1273_vm0, %v1272_v18 }
  0x8c   :  { %1245 = vmatmul.mubr.f32.vlgmr.msra.gmra.mxu1 %v35_v63  ;;  %1248 = vmatpush3.msra.mxu0 %v851_v0 }
  0x8d   :  { %1249 = vmatprep.subr.mxu0 %v1272_v18 }
  0x8e   :  { %1250 = vmatpush3.msra.mxu0 %v850_v1 }
  0x8f   :  { %1251 = vmatprep.subr.mxu0 %v1272_v18 }
  0x90   :  { %1252 = vmatpush3.msra.mxu0 %v849_v2 }
  0x91   :  { %1253 = vmatprep.subr.mxu0 %v1272_v18 }
  0x92   :  { %1254 = vmatpush3.msra.mxu0 %v848_v3 }
  0x93   :  { %1255 = vmatprep.subr.mxu0 %v1272_v18 }
  0x94   :  { %1256 = vmatpush3.msra.mxu0 %v847_v4 }
  0x95   :  { %1257 = vmatprep.subr.mxu0 %v1272_v18 }
  0x96   :  { %1258 = vmatpush3.msra.mxu0 %v846_v5 }
  0x97   :  { %1259 = vmatprep.subr.mxu0 %v1272_v18 }
  0x98   :  { %1260 = vmatpush3.msra.mxu0 %v845_v6 }
  0x99   :  { %1261 = vmatprep.subr.mxu0 %v1272_v18 }
  0x9a   :  { %1262 = vmatpush3.msra.mxu0 %v844_v7 }
  0xe4   :  { %v973_v8 = vpop.f32.mrf.mxu0 }
  0xe5   :  { %v1008_v9 = vpop.f32.mrf.mxu1 }
  0xe6   :  { %v974_v10 = vpop.f32.mrf.mxu0 }
  0xe7   :  { %v1009_v12 = vpop.f32.mrf.mxu1  ;;  %v975_v15 = vadd.f32 %v974_v10, %v973_v8 }
  0xe8   :  { %v1010_v16 = vadd.f32 %v1009_v12, %v1008_v9 }
  0xea   :  { %v413_v21 = vadd.f32 %v1010_v16, %v975_v15 }
 0x105   :  { %v1043_v11 = vpop.f32.mrf.mxu0 }
 0x107   :  { %v1044_v13 = vpop.f32.mrf.mxu0 }
 0x108   :  { %v1078_v14 = vpop.f32.mrf.mxu1  ;;  %v1045_v19 = vadd.f32 %v1044_v13, %v1043_v11 }
 0x10a   :  { %v1079_v20 = vpop.f32.mrf.mxu1  ;;  %v483_v24 = vadd.f32 %v1045_v19, %v413_v21 }
 0x10b   :  { %v1080_v25 = vadd.f32 %v1079_v20, %v1078_v14 }
 0x10d   :  { %v553_v27 = vadd.f32 %v1080_v25, %v483_v24 }
 0x127   :  { %v1113_v17 = vpop.f32.mrf.mxu0 }
 0x129   :  { %v1114_v22 = vpop.f32.mrf.mxu0 }
 0x12a   :  { %v1148_v23 = vpop.f32.mrf.mxu1  ;;  %v1115_v26 = vadd.f32 %v1114_v22, %v1113_v17 }
 0x12c   :  { %v1149_v18 = vpop.f32.mrf.mxu1  ;;  %v623_v28 = vadd.f32 %v1115_v26, %v553_v27 }
 0x12d   :  { %v1150_v29 = vadd.f32 %v1149_v18, %v1148_v23 }
 0x12f   :  { %v693_v32 = vadd.f32 %v1150_v29, %v623_v28 }
 0x148   :  { %v1183_v30 = vpop.f32.mrf.mxu0 }
 0x14a   :  { %v1184_v31 = vpop.f32.mrf.mxu0 }
 0x14b   :  { %v1185_v33 = vadd.f32 %v1184_v31, %v1183_v30 }
 0x14c   :  { %v832_v34 = vpop.f32.mrf.mxu1 }
 0x14d   :  { %v763_v35 = vadd.f32 %v1185_v33, %v693_v32 }
 0x14e   :  { %v1246_v36 = vpop.f32.mrf.mxu1 }
 0x14f   :  { %v833_v38 = vadd.f32 %v832_v34, %v763_v35 }
 0x151   :  { %v836_v39 = vadd.f32 %v833_v38, %v20_v37 }
 0x153   :  { %838 = vst.msk [vmem:[#allocation2] sm:$0xff] %vm18_vm1, %v836_v39 }
 0x15a   :  { %v842_v40 = vld [vmem:[#allocation2] sm:$0xff] }
 0x15b   :  { %v843_v41 = vmul.f32 %v842_v40, %v842_v40 }
 0x15d   :  { %1264 = vmatmul.mubr.msk.f32.vlgmr.msra.gmra.mxu0 %vm18_vm1, %v843_v41 }
 0x21d   :  { %v921_v42 = vpop.f32.mrf.mxu0 }
 0x21e   :  { %1268 = vrsqrt.f32 %v921_v42  ;;  %vm927_vm2 = vcmp.eq.f32.partialorder %v921_v42, inf  ;;  %v930_v46 = vand.u32 2147483648, %v921_v42  ;;  %vm929_vm3 = vcmp.eq.f32.partialorder %v921_v42, 0.0 }
 0x21f   :  { %v1265_v43 = vpop.f32.mrf.mxu0 }
 0x22b   :  { %v1269_v44 = vpop.eup %1268 }
 0x22c   :  { %v926_v45 = vmul.f32 %v1269_v44, %v921_v42 }
 0x22e   :  { %v928_v47 = vsel %vm927_vm2, %v921_v42, %v926_v45 }
 0x22f   :  { %v931_v48 = vsel %vm929_vm3, %v930_v46, %v928_v47 }
 0x230   :  { %v932_v49 = vadd.f32 1e-07, %v931_v48 }
 0x232   :  { %1270 = vrcp.f32 %v932_v49 }
 0x23f   :  { %v1271_v50 = vpop.eup %1270 }
 0x240   :  { %v934_v51 = vmul.f32 %v1271_v50, %v842_v40 }
 0x242   :  { %935 = vst.msk [vmem:[%s2120_s3] sm:$0xff] %vm18_vm1, %v934_v51 }

</bundles_post_ra>
